<compile_context>
chip_gen: v5e
topology: v5e:2x2
jax: 0.10.0
libtpu: 0.0.40
codegen_flags: <defaults>
</compile_context>

<pallas_src>
import jax
import jax.numpy as jnp
from jax import lax
from jax.experimental import pallas as pl
from jax.experimental.pallas import tpu as pltpu


def _round_up(x, m):
    return ((x + m - 1) // m) * m


# ----------------------------- Pallas kernel ------------------------------ #
def _conv_bn_relu_kernel(x_ref, w_ref, o_ref):
    # x_ref: (K_pad, Lt)   bf16  pre-stacked 9-tap rows + ones (bias) row + zero pad
    # w_ref: (C_out, K_pad) bf16  BN-scale-folded weights + bias column + zero pad
    # o_ref: (C_out, Lt)   f32   lane-dense output tile (flat NCHW layout)
    y = jnp.dot(w_ref[...], x_ref[...], preferred_element_type=jnp.float32)
    o_ref[...] = jnp.maximum(y, 0.0).astype(o_ref.dtype)


def _num_grid_steps(total_lanes):
    """2 parallel grid steps only where a 2nd TensorCore exists (v7x); else 1."""
    try:
        kind = jax.devices()[0].device_kind.lower()
    except Exception:
        kind = ""
    if ("v7" in kind or "7x" in kind) and total_lanes % 256 == 0:
        return 2
    return 1


# -------------------------------- wrapper ---------------------------------- #
def mixed_op_forward(x_nchw, weight, gamma, beta, run_mean, run_var,
                     num_bits=0, eps=1e-5):
    """Fused Conv3x3(stride=1, pad=1) + BatchNorm(inference) + ReLU.

    x_nchw: (N, C_in, H, W)   weight: (C_out, C_in, 3, 3)
    Returns (N, C_out, H, W) float32.
    """
    if num_bits != 0:
        # TODO(synk): quantized path (fake-quant); must be generation-aware
        #             (no int8 MXU on v7x, fp8 only).
        raise NotImplementedError("only num_bits=0 (full precision) is implemented")

    N, C_in, H, W = x_nchw.shape
    C_out = weight.shape[0]
    Hp, Wp = H + 2, W + 2
    Mt = _round_up(H * Wp, 128)                       # per-image lane-dense flat tile
    shifts = tuple(kh * Wp + kw for kh in range(3) for kw in range(3))
    L = shifts[-1] + Mt                               # flat length each tap slice needs
    K = 9 * C_in + 1                                  # 9 taps * C_in + ones(bias) row
    K_pad = _round_up(K, 16)                          # dense bf16 sublane packing

    # Fold inference-mode BN: scale into the weights, bias via the ones-row column.
    scale = (gamma * lax.rsqrt(run_var + eps)).astype(jnp.float32)
    bias = beta.astype(jnp.float32) - run_mean.astype(jnp.float32) * scale

    w_scaled = weight.astype(jnp.float32) * scale[:, None, None, None]       # (C_out,C_in,3,3)
    # column index = (kh*3+kw)*C_in + c  -> matches the activation row order below
    w_flat = jnp.transpose(w_scaled, (0, 2, 3, 1)).reshape(C_out, 9 * C_in)
    w_full = jnp.concatenate(
        [w_flat, bias[:, None], jnp.zeros((C_out, K_pad - K), jnp.float32)],
        axis=1).astype(jnp.bfloat16)                                         # (C_out, K_pad)

    # Activations: cast to bf16 first, then ONE pad covering the (1,1) halo plus
    # enough extra bottom rows that every tap slice [s : s+Mt] stays in bounds.
    extra_rows = -(-max(L - Hp * Wp, 0) // Wp)
    xb = x_nchw.astype(jnp.bfloat16)
    xp = jnp.pad(xb, ((0, 0), (0, 0), (1, 1 + extra_rows), (1, 1)))          # (N,C_in,Hp+e,Wp)
    xf = xp.reshape(N, C_in, -1)                                             # flat padded plane

    # Pre-stacked tap block: row = tap*C_in + c, then ones (bias) row, then zero pad.
    taps = jnp.stack([xf[:, :, s:s + Mt] for s in shifts], axis=1)           # (N,9,C_in,Mt)
    xs = jnp.concatenate(
        [taps.reshape(N, 9 * C_in, Mt),
         jnp.ones((N, 1, Mt), jnp.bfloat16),
         jnp.zeros((N, K_pad - K, Mt), jnp.bfloat16)], axis=1)               # (N,K_pad,Mt)
    xs = jnp.transpose(xs, (1, 0, 2)).reshape(K_pad, N * Mt)                 # batch on lanes

    total_lanes = N * Mt
    G = _num_grid_steps(total_lanes)     # 1 on single-TC v5e/v6e, 2 on v7x
    Lt = total_lanes // G

    out = pl.pallas_call(
        _conv_bn_relu_kernel,
        out_shape=jax.ShapeDtypeStruct((C_out, total_lanes), jnp.float32),
        grid=(G,),
        in_specs=[
            pl.BlockSpec((K_pad, Lt), lambda g: (0, g)),
            pl.BlockSpec((C_out, K_pad), lambda g: (0, 0)),
        ],
        out_specs=pl.BlockSpec((C_out, Lt), lambda g: (0, g)),
        compiler_params=pltpu.CompilerParams(
            dimension_semantics=("parallel",),
            vmem_limit_bytes=32 * 1024 * 1024),
    )(xs, w_full)

    # Valid columns are m = h*Wp + w with w in [0, W); the 2 extra columns per row
    # and the Mt tail are finite throwaway values.  Result is already NCHW-flat.
    # (At production sizes this cleanup slice should be fused into the consumer.)
    y = out.reshape(C_out, N, Mt).transpose(1, 0, 2)
    y = y[:, :, :H * Wp].reshape(N, C_out, H, Wp)[:, :, :, :W]
    return y


# ------------------------------- reference --------------------------------- #
def _reference(x_nchw, weight, gamma, beta, run_mean, run_var, eps=1e-5):
    # Mirrors the kernel's bf16 quantization of scale-folded weights, bias and
    # activations, with f32 accumulation -> tight tolerance is valid.
    scale = gamma * lax.rsqrt(run_var + eps)
    bias = (beta - run_mean * scale).astype(jnp.bfloat16).astype(jnp.float32)
    wq = (weight.astype(jnp.float32) * scale[:, None, None, None]
          ).astype(jnp.bfloat16).astype(jnp.float32)
    xq = x_nchw.astype(jnp.bfloat16).astype(jnp.float32)
    y = lax.conv_general_dilated(
        xq, wq, window_strides=(1, 1), padding=((1, 1), (1, 1)),
        dimension_numbers=("NCHW", "OIHW", "NCHW"))
    y = y + bias[None, :, None, None]
    return jnp.maximum(y, 0.0)


if __name__ == "__main__":
    # MixedOp(C_in=4, C_out=8, op_idx=<conv3x3>, layer_id=0, stride=1, num_bits_list=[0])
    N, C_in, H, W = 2, 4, 16, 16
    C_out = 8

    key = jax.random.PRNGKey(0)
    kx, kw, kg, kb, km, kv = jax.random.split(key, 6)

    x = jax.random.normal(kx, (N, C_in, H, W), dtype=jnp.float32)
    weight = 0.1 * jax.random.normal(kw, (C_out, C_in, 3, 3), dtype=jnp.float32)
    gamma = 1.0 + 0.1 * jax.random.normal(kg, (C_out,), dtype=jnp.float32)
    beta = 0.1 * jax.random.normal(kb, (C_out,), dtype=jnp.float32)
    run_mean = 0.1 * jax.random.normal(km, (C_out,), dtype=jnp.float32)
    run_var = jnp.abs(jax.random.normal(kv, (C_out,), dtype=jnp.float32)) + 0.5

    y = mixed_op_forward(x, weight, gamma, beta, run_mean, run_var, num_bits=0)
    y = jax.block_until_ready(y)

    y_ref = _reference(x, weight, gamma, beta, run_mean, run_var)
    assert y.shape == (N, C_out, H, W)
    assert jnp.allclose(y, y_ref, atol=2e-3, rtol=2e-3), "mismatch vs reference"

    print("KERNEL_OK")
</pallas_src>

<mosaic_0001>
module attributes {stable_mosaic.version = 11 : i64} {
  func.func @_conv_bn_relu_kernel(%arg0: i32, %arg1: memref<48x768xbf16, #tpu.memory_space<vmem>>, %arg2: memref<8x48xbf16, #tpu.memory_space<vmem>>, %arg3: memref<8x768xf32, #tpu.memory_space<vmem>>) attributes {dimension_semantics = [#tpu.dimension_semantics<parallel>], iteration_bounds = array<i64: 1>, scalar_prefetch = 0 : i64, scratch_operands = 0 : i64, tpu.core_type = #tpu.core_type<tc>, window_params = [{transform_indices = @transform_0, window_bounds = array<i64: 48, 768>}, {pipeline_mode = #tpu.pipeline_mode<synchronous>, transform_indices = @transform_1, window_bounds = array<i64: 8, 48>}, {transform_indices = @transform_2, window_bounds = array<i64: 8, 768>}]} {
    %c0 = arith.constant 0 : index
    %c0_0 = arith.constant 0 : index
    %0 = vector.load %arg2[%c0, %c0_0] : memref<8x48xbf16, #tpu.memory_space<vmem>>, vector<8x48xbf16>
    %c0_1 = arith.constant 0 : index
    %c0_2 = arith.constant 0 : index
    %1 = vector.load %arg1[%c0_1, %c0_2] : memref<48x768xbf16, #tpu.memory_space<vmem>>, vector<48x768xbf16>
    %cst = arith.constant dense<0.000000e+00> : vector<8x768xf32>
    %2 = tpu.matmul %0, %1, %cst {dimension_numbers = #tpu.dot_dimension_numbers<[1], [0], [0], [1], [0, 0, 1, 1], [], []>} : vector<8x48xbf16>, vector<48x768xbf16>, vector<8x768xf32> -> vector<8x768xf32>
    %cst_3 = arith.constant 0.000000e+00 : f32
    %3 = vector.broadcast %cst_3 : f32 to vector<8x768xf32>
    %4 = arith.maximumf %2, %3 : vector<8x768xf32>
    %c0_4 = arith.constant 0 : index
    %c0_5 = arith.constant 0 : index
    %5 = vector.load %arg3[%c0_4, %c0_5] : memref<8x768xf32, #tpu.memory_space<vmem>>, vector<8x768xf32>
    tpu.vector_store %arg3[%c0_4, %c0_5], %4 {strides = array<i32>} : memref<8x768xf32, #tpu.memory_space<vmem>>, vector<8x768xf32>,
    return
  }
  func.func @transform_0(%arg0: i32) -> (i32, i32) {
    %c0_i32 = arith.constant 0 : i32
    %c0_i32_0 = arith.constant 0 : i32
    return %c0_i32, %arg0 : i32, i32
  }
  func.func @transform_1(%arg0: i32) -> (i32, i32) {
    %c0_i32 = arith.constant 0 : i32
    %c0_i32_0 = arith.constant 0 : i32
    %c0_i32_1 = arith.constant 0 : i32
    return %c0_i32, %c0_i32_0 : i32, i32
  }
  func.func @transform_2(%arg0: i32) -> (i32, i32) {
    %c0_i32 = arith.constant 0 : i32
    %c0_i32_0 = arith.constant 0 : i32
    return %c0_i32, %arg0 : i32, i32
  }
}

</mosaic_0001>

<bundles_post_ra>
// kernel: tpu_custom_call.1
= control target key start
LH: loop header
LB: loop body
LE: loop exit
PB: predicated region body
PF: predicated region fallthrough
CT: control target
= control target key end

     0   :  { %7 = vsyncpa [#allocation3], 0  ;;  %s478_s0 = inlined_call_operand.hbm [shape: bf16[48,768], index: 0, kind: input, shape index: {}]   ;;  %s479_s1 = inlined_call_operand.hbm [shape: bf16[8,48], index: 1, kind: input, shape index: {}]   ;;  %s480_s2 = inlined_call_operand.hbm [shape: f32[8,768], index: 2, kind: output, shape index: {}]  }
   0x1   :  { %8 = vsyncpa [#allocation6], 0 }
   0x2   :  { %9 = vsyncpa [#allocation4], 0  ;;  %s14_s11 = sshll.u32 %s478_s0, 4  ;;  %s443_s12 = smov [#allocation2]   ;;  %s15_s11 = int_to_ptr.hbm [resolvable:$true] %s14_s11 }
   0x3   :  { %s16_s13 = sshll.u32 %s443_s12, 4  ;;  %s28_s16 = sshll.u32 %s479_s1, 4  ;;  %s17_s13 = int_to_ptr.vmem [resolvable:$true] %s16_s13  ;;  %s29_s16 = int_to_ptr.hbm [resolvable:$true] %s28_s16 }
   0x4   :  { %s444_s17 = smov 384   ;;  %s445_s18 = smov 24  }
   0x5   :  { %22 = dma.hbm_to_vmem [thread:$0]  %s15_s11, 2304, %s17_s13, [#allocation3], %s444_s17, %s444_s17, %s445_s18  }
   0x6   :  { %s446_s19 = smov [#allocation5]  }
   0x7   :  { %s30_s20 = sshll.u32 %s446_s19, 4  ;;  %s31_s20 = int_to_ptr.vmem [resolvable:$true] %s30_s20 }
   0x8   :  { %33 = dma.hbm_to_vmem [thread:$0]  %s29_s16, 64, %s31_s20, [#allocation6]  }
   0x9   :  { %437 = dma.done.wait [#allocation3], 2304  }
   0xa   :  { %438 = vsyncadd [#allocation3], 4294964992 }
   0xb   :  { %439 = dma.done.wait [#allocation6], 64  }
   0xc   :  { %440 = vsyncadd [#allocation6], 4294967232  ;;  %v314_v0 = vld [vmem:[#allocation2 + $0x60] sm:$0xf]  ;;  %v357_v1 = vld [vmem:[#allocation2 + $0x74] sm:$0xf0] }
   0xd   :  { %v354_v2 = vld [vmem:[#allocation2 + $0x64] sm:$0xf]  ;;  %v315_v3 = vor.u32 %v357_v1, %v314_v0  ;;  %v316_v4 = vld [vmem:[#allocation2 + $0x78] sm:$0xf0]  ;;  %v322_v5 = vld [vmem:[#allocation2 + $0x68] sm:$0xf] }
   0xe   :  { %v358_v6 = vld [vmem:[#allocation2 + $0x7c] sm:$0xf0]  ;;  %v319_v7 = vor.u32 %v354_v2, %v316_v4  ;;  %v355_v9 = vld [vmem:[#allocation2 + $0x6c] sm:$0xf]  ;;  %v324_v10 = vld [vmem:[#allocation2 + $0x80] sm:$0xf0] }
   0xf   :  { %v323_v8 = vor.u32 %v358_v6, %v322_v5  ;;  %v290_v11 = vld [vmem:[#allocation2 + $0x30] sm:$0xf]  ;;  %161 = vmatpush.bf16.msra.mxu0 %v315_v3  ;;  %v327_v12 = vor.u32 %v355_v9, %v324_v10  ;;  %v351_v13 = vld [vmem:[#allocation2 + $0x44] sm:$0xf0]  ;;  %v348_v14 = vld [vmem:[#allocation2 + $0x34] sm:$0xf] }
  0x10   :  { %v292_v15 = vld [vmem:[#allocation2 + $0x48] sm:$0xf0]  ;;  %174 = vmatpush.bf16.msra.mxu1 %v319_v7  ;;  %v291_v16 = vor.u32 %v351_v13, %v290_v11  ;;  %v298_v18 = vld [vmem:[#allocation2 + $0x38] sm:$0xf]  ;;  %v352_v19 = vld [vmem:[#allocation2 + $0x4c] sm:$0xf0] }
  0x11   :  { %187 = vmatpush.bf16.msra.mxu2 %v323_v8  ;;  %v295_v17 = vor.u32 %v348_v14, %v292_v15  ;;  %v349_v20 = vld [vmem:[#allocation2 + $0x3c] sm:$0xf]  ;;  %200 = vmatpush.bf16.msra.mxu3 %v327_v12  ;;  %v299_v21 = vor.u32 %v352_v19, %v298_v18  ;;  %v300_v22 = vld [vmem:[#allocation2 + $0x50] sm:$0xf0]  ;;  %v266_v23 = vld [vmem:[#allocation2] sm:$0xf] }
  0x12   :  { %v345_v24 = vld [vmem:[#allocation2 + $0x14] sm:$0xf0]  ;;  %v303_v25 = vor.u32 %v349_v20, %v300_v22  ;;  %v342_v26 = vld [vmem:[#allocation2 + $0x4] sm:$0xf]  ;;  %v268_v27 = vld [vmem:[#allocation2 + $0x18] sm:$0xf0] }
  0x13   :  { %v274_v28 = vld [vmem:[#allocation2 + $0x8] sm:$0xf]  ;;  %162 = vmatpush.bf16.msra.mxu0 %v291_v16  ;;  %v267_v29 = vor.u32 %v345_v24, %v266_v23  ;;  %v346_v30 = vld [vmem:[#allocation2 + $0x1c] sm:$0xf0]  ;;  %v343_v31 = vld [vmem:[#allocation2 + $0xc] sm:$0xf]  ;;  %v271_v33 = vor.u32 %v342_v26, %v268_v27 }
  0x14   :  { %v276_v32 = vld [vmem:[#allocation2 + $0x20] sm:$0xf0]  ;;  %175 = vmatpush.bf16.msra.mxu1 %v295_v17  ;;  %v275_v34 = vor.u32 %v346_v30, %v274_v28  ;;  %v330_v35 = vld [vmem:[#allocation2 + $0x70] sm:$0xf]  ;;  %v359_v36 = vld [vmem:[#allocation2 + $0x84] sm:$0xf0] }
  0x15   :  { %188 = vmatpush.bf16.msra.mxu2 %v299_v21  ;;  %201 = vmatpush.bf16.msra.mxu3 %v303_v25  ;;  %v279_v37 = vor.u32 %v343_v31, %v276_v32  ;;  %v331_v38 = vor.u32 %v359_v36, %v330_v35  ;;  %v356_v39 = vld [vmem:[#allocation2 + $0x74] sm:$0xf]  ;;  %v332_v40 = vld [vmem:[#allocation2 + $0x88] sm:$0xf0]  ;;  %vm152_vm0 = vcmask 392192   ;;  %s447_s0 = smov [#allocation7]  }
  0x16   :  { %v335_v41 = vor.u32 %v356_v39, %v332_v40  ;;  %v306_v42 = vld [vmem:[#allocation2 + $0x40] sm:$0xf]  ;;  %v353_v43 = vld [vmem:[#allocation2 + $0x54] sm:$0xf0]  ;;  %v43_v44 = vld [vmem:[#allocation5] sm:$0xf] }
  0x17   :  { %163 = vmatpush.bf16.msra.mxu0 %v267_v29  ;;  %v350_v45 = vld [vmem:[#allocation2 + $0x44] sm:$0xf]  ;;  %v308_v46 = vld [vmem:[#allocation2 + $0x58] sm:$0xf0]  ;;  %v307_v47 = vor.u32 %v353_v43, %v306_v42  ;;  %v282_v49 = vld [vmem:[#allocation2 + $0x10] sm:$0xf] }
  0x18   :  { %176 = vmatpush.bf16.msra.mxu1 %v271_v33  ;;  %v311_v48 = vor.u32 %v350_v45, %v308_v46  ;;  %v347_v50 = vld [vmem:[#allocation2 + $0x24] sm:$0xf0]  ;;  %v344_v51 = vld [vmem:[#allocation2 + $0x14] sm:$0xf]  ;;  %v284_v52 = vld [vmem:[#allocation2 + $0x28] sm:$0xf0] }
  0x19   :  { %189 = vmatpush.bf16.msra.mxu2 %v275_v34  ;;  %202 = vmatpush.bf16.msra.mxu3 %v279_v37  ;;  %v283_v53 = vor.u32 %v347_v50, %v282_v49  ;;  %v287_v54 = vor.u32 %v344_v51, %v284_v52  ;;  %s251_s1 = sshll.u32 %s447_s0, 4  ;;  %s253_s23 = sshll.u32 %s480_s2, 4  ;;  %s252_s1 = int_to_ptr.vmem [resolvable:$true] %s251_s1  ;;  %s254_s23 = int_to_ptr.hbm [resolvable:$true] %s253_s23 }
  0x1a   :  { %336 = vmatmul.msk.bf16.vlgmr.msra.gmra.mxu0 %vm152_vm0, %v43_v44 }
  0x1b   :  { %213 = vmatpush.bf16.msrb.mxu0 %v331_v38  ;;  %337 = vmatmul.msk.bf16.vlgmr.msra.gmra.mxu1 %vm152_vm0, %v43_v44 }
  0x1c   :  { %226 = vmatpush.bf16.msrb.mxu1 %v335_v41  ;;  %338 = vmatmul.msk.bf16.vlgmr.msra.gmra.mxu2 %vm152_vm0, %v43_v44 }
  0x1d   :  { %339 = vmatmul.msk.bf16.vlgmr.msra.gmra.mxu3 %vm152_vm0, %v43_v44 }
  0x1f   :  { %214 = vmatpush.bf16.msrb.mxu0 %v307_v47 }
  0x20   :  { %227 = vmatpush.bf16.msrb.mxu1 %v311_v48 }
  0x23   :  { %215 = vmatpush.bf16.msrb.mxu0 %v283_v53 }
  0x24   :  { %228 = vmatpush.bf16.msrb.mxu1 %v287_v54 }
  0x2a   :  { %340 = vmatmul.msk.bf16.vlgmr.msrb.gmra.mxu0 %vm152_vm0, %v43_v44 }
  0x2b   :  { %341 = vmatmul.msk.bf16.vlgmr.msrb.gmra.mxu1 %vm152_vm0, %v43_v44 }
  0x97   :  { %v165_v55 = vpop.f32.mrf.mxu0 }
  0x98   :  { %v234_v56 = vmax.f32 %v165_v55, 0.0  ;;  %v178_v57 = vpop.f32.mrf.mxu1 }
  0x99   :  { %v235_v58 = vmax.f32 %v178_v57, 0.0 }
  0x9a   :  { %240 = vst [vmem:[#allocation7] sm:$0xff] %v234_v56 }
  0x9b   :  { %241 = vst [vmem:[#allocation7 + $0x8] sm:$0xff] %v235_v58 }
  0x9f   :  { %v191_v59 = vpop.f32.mrf.mxu2  ;;  %v167_v60 = vpop.f32.mrf.mxu0 }
  0xa0   :  { %v236_v61 = vmax.f32 %v191_v59, 0.0  ;;  %v204_v62 = vpop.f32.mrf.mxu3  ;;  %v180_v63 = vpop.f32.mrf.mxu1 }
  0xa1   :  { %v237_v0 = vmax.f32 %v204_v62, 0.0 }
  0xa2   :  { %242 = vst [vmem:[#allocation7 + $0x10] sm:$0xff] %v236_v61 }
  0xa3   :  { %243 = vst [vmem:[#allocation7 + $0x18] sm:$0xff] %v237_v0 }
  0xa7   :  { %v193_v1 = vpop.f32.mrf.mxu2  ;;  %v217_v3 = vpop.f32.mrf.mxu0 }
  0xa8   :  { %v206_v2 = vpop.f32.mrf.mxu3  ;;  %v238_v4 = vmax.f32 %v217_v3, 0.0  ;;  %v230_v5 = vpop.f32.mrf.mxu1 }
  0xa9   :  { %v239_v6 = vmax.f32 %v230_v5, 0.0 }
  0xaa   :  { %244 = vst [vmem:[#allocation7 + $0x20] sm:$0xff] %v238_v4 }
  0xab   :  { %245 = vst [vmem:[#allocation7 + $0x28] sm:$0xff] %v239_v6 }
  0xac   :  { %256 = dma.vmem_to_hbm [thread:$0]  %s252_s1, 768, %s254_s23, [#allocation4]  }
  0xaf   :  { %v219_v7 = vpop.f32.mrf.mxu0 }
  0xb0   :  { %v232_v8 = vpop.f32.mrf.mxu1 }
  0xb1   :  { %441 = dma.done.wait [#allocation4], 768  }
  0xb2   :  { %442 = vsyncadd [#allocation4], 4294966528 }
  0xb3   :  { %261 = vsyncpa [#allocation3], 1 }
  0xb4   :  { %262 = vsyncpa [#allocation6], 1 }
  0xb5   :  { %263 = vsyncpa [#allocation4], 1 }

</bundles_post_ra>
